<compile_context>
chip_gen: v7x
topology: tpu7x:2x2x1
jax: 0.10.0
libtpu: 0.0.40
codegen_flags: <defaults>
</compile_context>

<pallas_src>
import functools

import jax
import jax.numpy as jnp
from jax.experimental import pallas as pl
from jax.experimental.pallas import tpu as pltpu


def _transe_score_kernel(h_ref, r_ref, t_ref, out_ref):
    """h/r/t blocks are (D, TB) with the batch on the 128-lane axis.

    scores[b] = || h[:, b] + r[:, b] - t[:, b] ||_2  (L2 over embedding dim).
    Sublane (axis=0) reduce -> lane-dense (1, TB) output block (unmasked vst).
    """
    d = (h_ref[...].astype(jnp.float32)
         + r_ref[...].astype(jnp.float32)
         - t_ref[...].astype(jnp.float32))
    out_ref[...] = jnp.sqrt(jnp.sum(d * d, axis=0, keepdims=True))


def _round_up(x, m):
    return ((x + m - 1) // m) * m


@functools.partial(jax.jit, static_argnames=("block_b",))
def transe_forward(entity_emb_t, relation_emb_t, heads, relations, tails,
                   *, block_b=16384):
    """Pallas equivalent of TransE.forward.

    entity_emb_t:   (D, num_entities)  feature-major embedding table
    relation_emb_t: (D, num_relations) feature-major embedding table
    heads/relations/tails: (B,) integer ids
    returns: (B,) float32 scores, scores[i] = ||E[h_i] + R[r_i] - E[t_i]||_2
    """
    D = entity_emb_t.shape[0]
    B = heads.shape[0]

    heads = heads.astype(jnp.int32)
    relations = relations.astype(jnp.int32)
    tails = tails.astype(jnp.int32)

    # --- choose batch tile (multiple of 128 lanes) -------------------------
    itemsize = jnp.dtype(entity_emb_t.dtype).itemsize
    b_round = _round_up(B, 128)

    # Keep 3 inputs x 2 pipeline buffers x (D, tb) under ~12 MiB of VMEM
    # (safe for v5e 16 MiB scoped default and v7x 32 MiB scoped / 64 MiB phys).
    vmem_budget = 12 * 1024 * 1024
    tb_cap = max(128, (vmem_budget // (6 * D * itemsize)) // 128 * 128)
    # Keep >= 2 grid steps when the batch allows it, so v7x's two TensorCores
    # can both work on the "parallel" batch axis.
    half = max(128, _round_up(b_round // 2, 128))
    tb = min(block_b, tb_cap, half)

    grid_b = pl.cdiv(b_round, tb)
    b_pad = grid_b * tb

    # Pad the cheap int32 index vectors (not the big slabs) before the gather.
    pad = b_pad - B
    if pad:
        heads = jnp.pad(heads, (0, pad))
        relations = jnp.pad(relations, (0, pad))
        tails = jnp.pad(tails, (0, pad))

    # Feature-major gather: directly yields (D, b_pad) slabs, no transpose.
    h = jnp.take(entity_emb_t, heads, axis=1)        # (D, b_pad)
    r = jnp.take(relation_emb_t, relations, axis=1)  # (D, b_pad)
    t = jnp.take(entity_emb_t, tails, axis=1)        # (D, b_pad)

    grid_spec = pl.GridSpec(
        grid=(grid_b,),
        in_specs=[
            pl.BlockSpec((D, tb), lambda i: (0, i)),   # head slab
            pl.BlockSpec((D, tb), lambda i: (0, i)),   # relation slab
            pl.BlockSpec((D, tb), lambda i: (0, i)),   # tail slab
        ],
        out_specs=pl.BlockSpec((1, tb), lambda i: (0, i)),  # lane-dense scores
    )

    out = pl.pallas_call(
        _transe_score_kernel,
        out_shape=jax.ShapeDtypeStruct((1, b_pad), jnp.float32),
        grid_spec=grid_spec,
        compiler_params=pltpu.CompilerParams(
            dimension_semantics=("parallel",),   # independent batch tiles
        ),
    )(h, r, t)

    return out[0, :B]


def validate_triples(num_entities, num_relations, heads, relations, tails):
    """Eager (non-jittable) equivalent of the PyTorch module's range checks."""
    # TODO(synk): inside jit, out-of-range ids are clamped by jnp.take instead
    # of raising; call this eagerly to preserve the module's ValueError semantics.
    if int(jnp.max(heads)) >= num_entities or int(jnp.min(heads)) < 0:
        raise ValueError("head entity id out of range")
    if int(jnp.max(relations)) >= num_relations or int(jnp.min(relations)) < 0:
        raise ValueError("relation id out of range")
    if int(jnp.max(tails)) >= num_entities or int(jnp.min(tails)) < 0:
        raise ValueError("tail entity id out of range")


def xavier_uniform(key, shape, dtype=jnp.float32):
    fan_in, fan_out = shape[1], shape[0]
    bound = (6.0 / (fan_in + fan_out)) ** 0.5
    return jax.random.uniform(key, shape, dtype=dtype, minval=-bound, maxval=bound)


def init_transe_params(key, num_entities, num_relations, embedding_dim,
                       dtype=jnp.bfloat16):
    """Returns FEATURE-MAJOR tables: (D, num_entities), (D, num_relations)."""
    k_ent, k_rel = jax.random.split(key)
    entity_emb = xavier_uniform(k_ent, (num_entities, embedding_dim))
    relation_emb = xavier_uniform(k_rel, (num_relations, embedding_dim))
    # F.normalize(entity_embeddings.weight, p=2, dim=1)
    norm = jnp.sqrt(jnp.sum(entity_emb * entity_emb, axis=1, keepdims=True))
    entity_emb = entity_emb / jnp.maximum(norm, 1e-12)
    return entity_emb.T.astype(dtype), relation_emb.T.astype(dtype)


if __name__ == "__main__":
    num_entities = 50
    num_relations = 10
    embedding_dim = 32
    batch = 8

    key = jax.random.PRNGKey(0)
    k_params, k_h, k_r, k_t = jax.random.split(key, 4)

    # bf16 feature-major tables (halves HBM read traffic; kernel computes in f32).
    entity_emb_t, relation_emb_t = init_transe_params(
        k_params, num_entities, num_relations, embedding_dim, dtype=jnp.bfloat16)

    heads = jax.random.randint(k_h, (batch,), 0, num_entities, dtype=jnp.int32)
    relations = jax.random.randint(k_r, (batch,), 0, num_relations, dtype=jnp.int32)
    tails = jax.random.randint(k_t, (batch,), 0, num_entities, dtype=jnp.int32)

    # Range validation kept OUTSIDE the jitted hot path (spec semantics).
    validate_triples(num_entities, num_relations, heads, relations, tails)

    scores = transe_forward(entity_emb_t, relation_emb_t, heads, relations, tails)
    scores = jax.block_until_ready(scores)

    # Pure-JAX reference (same bf16-stored values, f32 math).
    h = entity_emb_t[:, heads].astype(jnp.float32)
    r = relation_emb_t[:, relations].astype(jnp.float32)
    t = entity_emb_t[:, tails].astype(jnp.float32)
    ref = jnp.sqrt(jnp.sum((h + r - t) ** 2, axis=0))

    assert scores.shape == (batch,)
    assert jnp.allclose(scores, ref, atol=1e-5, rtol=1e-5), (scores, ref)

    print("KERNEL_OK")
</pallas_src>

<mosaic_0001>
module attributes {stable_mosaic.version = 11 : i64} {
  func.func @_transe_score_kernel(%arg0: i32, %arg1: memref<32x128xbf16, #tpu.memory_space<vmem>>, %arg2: memref<32x128xbf16, #tpu.memory_space<vmem>>, %arg3: memref<32x128xbf16, #tpu.memory_space<vmem>>, %arg4: memref<1x128xf32, #tpu.memory_space<vmem>>) attributes {dimension_semantics = [#tpu.dimension_semantics<parallel>], iteration_bounds = array<i64: 1>, scalar_prefetch = 0 : i64, scratch_operands = 0 : i64, tpu.core_type = #tpu.core_type<tc>, window_params = [{transform_indices = @transform_0, window_bounds = array<i64: 32, 128>}, {transform_indices = @transform_1, window_bounds = array<i64: 32, 128>}, {transform_indices = @transform_2, window_bounds = array<i64: 32, 128>}, {transform_indices = @transform_3, window_bounds = array<i64: 1, 128>}]} {
    %c0 = arith.constant 0 : index
    %c0_0 = arith.constant 0 : index
    %0 = vector.load %arg1[%c0, %c0_0] : memref<32x128xbf16, #tpu.memory_space<vmem>>, vector<32x128xbf16>
    %1 = arith.extf %0 : vector<32x128xbf16> to vector<32x128xf32>
    %c0_1 = arith.constant 0 : index
    %c0_2 = arith.constant 0 : index
    %2 = vector.load %arg2[%c0_1, %c0_2] : memref<32x128xbf16, #tpu.memory_space<vmem>>, vector<32x128xbf16>
    %3 = arith.extf %2 : vector<32x128xbf16> to vector<32x128xf32>
    %4 = arith.addf %1, %3 : vector<32x128xf32>
    %c0_3 = arith.constant 0 : index
    %c0_4 = arith.constant 0 : index
    %5 = vector.load %arg3[%c0_3, %c0_4] : memref<32x128xbf16, #tpu.memory_space<vmem>>, vector<32x128xbf16>
    %6 = arith.extf %5 : vector<32x128xbf16> to vector<32x128xf32>
    %7 = arith.subf %4, %6 : vector<32x128xf32>
    %8 = arith.mulf %7, %7 : vector<32x128xf32>
    %cst = arith.constant dense<0.000000e+00> : vector<128xf32>
    %9 = vector.multi_reduction <add>, %8, %cst [0] : vector<32x128xf32> to vector<128xf32>
    %10 = vector.shape_cast %9 : vector<128xf32> to vector<1x128xf32>
    %11 = math.sqrt %10 : vector<1x128xf32>
    %c0_5 = arith.constant 0 : index
    %c0_6 = arith.constant 0 : index
    %12 = vector.load %arg4[%c0_5, %c0_6] : memref<1x128xf32, #tpu.memory_space<vmem>>, vector<1x128xf32>
    tpu.vector_store %arg4[%c0_5, %c0_6], %11 {strides = array<i32>} : memref<1x128xf32, #tpu.memory_space<vmem>>, vector<1x128xf32>,
    return
  }
  func.func @transform_0(%arg0: i32) -> (i32, i32) {
    %c0_i32 = arith.constant 0 : i32
    %c0_i32_0 = arith.constant 0 : i32
    return %c0_i32, %arg0 : i32, i32
  }
  func.func @transform_1(%arg0: i32) -> (i32, i32) {
    %c0_i32 = arith.constant 0 : i32
    %c0_i32_0 = arith.constant 0 : i32
    return %c0_i32, %arg0 : i32, i32
  }
  func.func @transform_2(%arg0: i32) -> (i32, i32) {
    %c0_i32 = arith.constant 0 : i32
    %c0_i32_0 = arith.constant 0 : i32
    return %c0_i32, %arg0 : i32, i32
  }
  func.func @transform_3(%arg0: i32) -> (i32, i32) {
    %c0_i32 = arith.constant 0 : i32
    %c0_i32_0 = arith.constant 0 : i32
    return %c0_i32, %arg0 : i32, i32
  }
}

</mosaic_0001>

<bundles_post_ra>
// kernel: transe_forward.1
= control target key start
LH: loop header
LB: loop body
LE: loop exit
PB: predicated region body
PF: predicated region fallthrough
CT: control target
= control target key end

     0   :  { %s141_s0 = inlined_call_operand.vmem [shape: bf16[32,128], index: 0, kind: input, shape index: {}]   ;;  %s142_s1 = inlined_call_operand.vmem [shape: bf16[32,128], index: 1, kind: input, shape index: {}]   ;;  %s143_s2 = inlined_call_operand.vmem [shape: bf16[32,128], index: 2, kind: input, shape index: {}]   ;;  %s144_s3 = inlined_call_operand.vmem [shape: f32[1,128], index: 3, kind: output, shape index: {}]  }
   0x1   :  { %v72_v0 = vld [vmem:[%s141_s0] sm:$0xff]   ;;  %v95_v1 = vld [vmem:[%s141_s0 + $0x8] sm:$0xff]  }
   0x2   :  { %v80_v2 = vld [vmem:[%s142_s1] sm:$0xff]   ;;  %v73_v3 = vunpack.c.l.bf16 %v72_v0  ;;  %v74_v4 = vunpack.c.h.bf16 %v72_v0  ;;  %v77_v5 = vunpack.c.l.bf16 %v95_v1  ;;  %v78_v6 = vunpack.c.h.bf16 %v95_v1  ;;  %v96_v7 = vld [vmem:[%s142_s1 + $0x8] sm:$0xff]  }
   0x3   :  { %v88_v8 = vld [vmem:[%s143_s2] sm:$0xff]   ;;  %v97_v9 = vld [vmem:[%s143_s2 + $0x8] sm:$0xff]   ;;  %v81_v10 = vunpack.c.l.bf16 %v80_v2  ;;  %v82_v11 = vunpack.c.h.bf16 %v80_v2  ;;  %v85_v12 = vunpack.c.l.bf16 %v96_v7  ;;  %v86_v13 = vunpack.c.h.bf16 %v96_v7 }
   0x4   :  { %v89_v14 = vunpack.c.l.bf16 %v88_v8  ;;  %v90_v15 = vunpack.c.h.bf16 %v88_v8  ;;  %v93_v16 = vunpack.c.l.bf16 %v97_v9  ;;  %v94_v17 = vunpack.c.h.bf16 %v97_v9 }
   0x5   :  { %v30_v18 = vadd.f32 %v81_v10, %v73_v3  ;;  %v31_v19 = vadd.f32 %v82_v11, %v74_v4  ;;  %v32_v20 = vadd.f32 %v85_v12, %v77_v5  ;;  %v33_v21 = vadd.f32 %v86_v13, %v78_v6 }
   0x7   :  { %v42_v22 = vsub.f32 %v30_v18, %v89_v14  ;;  %v43_v23 = vsub.f32 %v31_v19, %v90_v15  ;;  %v44_v24 = vsub.f32 %v32_v20, %v93_v16  ;;  %v45_v25 = vsub.f32 %v33_v21, %v94_v17 }
   0x9   :  { %v46_v26 = vmul.f32 %v42_v22, %v42_v22  ;;  %v47_v27 = vmul.f32 %v43_v23, %v43_v23  ;;  %v48_v28 = vmul.f32 %v44_v24, %v44_v24  ;;  %v49_v29 = vmul.f32 %v45_v25, %v45_v25 }
   0xb   :  { %v50_v30 = vadd.f32 %v47_v27, %v46_v26 }
   0xd   :  { %v51_v31 = vadd.f32 %v50_v30, %v48_v28 }
   0xf   :  { %v52_v32 = vadd.f32 %v51_v31, %v49_v29 }
  0x11   :  { %v53_v33 = vrot.slane %v52_v32, 4 }
  0x13   :  { %v54_v34 = vadd.f32 %v53_v33, %v52_v32 }
  0x15   :  { %v55_v35 = vrot.slane %v54_v34, 2 }
  0x17   :  { %v56_v36 = vadd.f32 %v55_v35, %v54_v34 }
  0x19   :  { %v57_v37 = vrot.slane %v56_v36, 1 }
  0x1b   :  { %v58_v38 = vadd.f32 %v57_v37, %v56_v36 }
  0x1d   :  { %98 = vrsqrt.f32 %v58_v38  ;;  %vm61_vm0 = vcmp.eq.f32.partialorder %v58_v38, inf  ;;  %v64_v40 = vand.u32 2147483648, %v58_v38  ;;  %vm63_vm1 = vcmp.eq.f32.partialorder %v58_v38, 0.0 }
  0x27   :  { %v99_v39 = vpop.eup %98 }
  0x28   :  { %v60_v41 = vmul.f32 %v99_v39, %v58_v38 }
  0x2a   :  { %v62_v42 = vsel %vm61_vm0, %v58_v38, %v60_v41 }
  0x2b   :  { %v65_v43 = vsel %vm63_vm1, %v64_v40, %v62_v42 }
  0x2c   :  { %66 = vst [vmem:[%s144_s3] sm:$0x1] %v65_v43 }

</bundles_post_ra>
